<compile_context>
chip_gen: v5e
topology: v5e:2x2
jax: 0.10.0
libtpu: 0.0.40
codegen_flags: <defaults>
</compile_context>

<pallas_src>
import functools

import jax
import jax.numpy as jnp
from jax.experimental import pallas as pl
from jax.experimental.pallas import tpu as pltpu

LANE = 128


def _round_up(v, m):
    return ((v + m - 1) // m) * m


def _vmem_capacity_bytes():
    """Physical VMEM of the current TPU generation (conservative fallback)."""
    try:
        cap = int(pltpu.get_tpu_info().vmem_capacity_bytes)
        if cap > 0:
            return cap
    except Exception:
        pass
    return 64 << 20  # v7x-sized conservative default


def _pick_row_tile(n, resident_bytes, vmem_limit, vmem_cap):
    """Row-tile for streaming A: multiple of 16, capped by the VMEM budget."""
    avail = max(vmem_limit - resident_bytes - (4 << 20), 2 << 20)
    # two double-buffered A tiles + per-step output/scratch headroom
    budget = min(vmem_cap // 8, avail // 3)
    cap = max(_round_up(n, 16), 16)
    fits = [t for t in (2048, 1024, 512, 256, 128, 64, 32, 16)
            if t <= cap and t * n * 2 <= budget]
    if not fits:
        return 16
    for t in fits:            # prefer a divisor of N (no row padding needed)
        if n % t == 0:
            return t
    return fits[0]


# ----------------------------------------------------------------------------
# Kernels
# ----------------------------------------------------------------------------
def _fused_gcn_kernel(a_ref, x_ref, w1_ref, b1_ref, w2_ref, b2_ref, out_ref):
    """Both GCN layers with A resident in VMEM (single HBM pass over A)."""
    xw1 = jnp.dot(x_ref[...], w1_ref[...], preferred_element_type=jnp.float32)
    h = jnp.dot(a_ref[...], xw1.astype(jnp.bfloat16),
                preferred_element_type=jnp.float32)
    h = jnp.maximum(h + b1_ref[...], 0.0)          # ReLU; dropout(eval)=identity
    hw2 = jnp.dot(h.astype(jnp.bfloat16), w2_ref[...],
                  preferred_element_type=jnp.float32)
    out = jnp.dot(a_ref[...], hw2.astype(jnp.bfloat16),
                  preferred_element_type=jnp.float32)
    out_ref[...] = (out + b2_ref[...]).astype(out_ref.dtype)


def _xw_kernel(x_ref, w_ref, out_ref):
    """Hoisted feature transform: XW = X @ W (row-tiled, one pass over X)."""
    out_ref[...] = jnp.dot(x_ref[...], w_ref[...],
                           preferred_element_type=jnp.float32
                           ).astype(out_ref.dtype)


def _agg_relu_xform_kernel(a_ref, xw_ref, b_ref, w2_ref, out_ref):
    """Layer-1 aggregation + ReLU, with layer-2's feature transform fused in:
       HW2_tile = relu(A_tile @ XW1 + b1) @ W2."""
    h = jnp.dot(a_ref[...], xw_ref[...], preferred_element_type=jnp.float32)
    h = jnp.maximum(h + b_ref[...], 0.0)           # dropout(eval) = identity
    out_ref[...] = jnp.dot(h.astype(jnp.bfloat16), w2_ref[...],
                           preferred_element_type=jnp.float32
                           ).astype(out_ref.dtype)


def _agg_bias_kernel(a_ref, hw_ref, b_ref, out_ref):
    """Layer-2 aggregation: out_tile = A_tile @ HW2 + b2."""
    out_ref[...] = (jnp.dot(a_ref[...], hw_ref[...],
                            preferred_element_type=jnp.float32)
                    + b_ref[...]).astype(out_ref.dtype)


# ----------------------------------------------------------------------------
# Forward
# ----------------------------------------------------------------------------
def embedding_gcn_forward(a_norm, x, w1, b1, w2, b2, *, force_streaming=False):
    """relu(A @ (X @ W1) + b1) -> dropout(eval) -> A @ (H @ W2) + b2."""
    n, f_in = x.shape
    h_dim = w1.shape[1]
    c_dim = w2.shape[1]
    hp = _round_up(h_dim, LANE)
    cp = _round_up(c_dim, LANE)

    # bf16 operands (halved HBM traffic for A); cast fuses under jit.
    a_bf = a_norm.astype(jnp.bfloat16)
    x_bf = x.astype(jnp.bfloat16)

    # Zero-pad feature dims to 128 lanes (lane-dense stores; zeros propagate
    # harmlessly: padded H columns are relu(0)=0, padded W2 rows are 0).
    w1p = jnp.zeros((f_in, hp), jnp.bfloat16).at[:, :h_dim].set(
        w1.astype(jnp.bfloat16))
    b1p = jnp.zeros((1, hp), jnp.float32).at[:, :h_dim].set(
        b1.reshape(1, -1).astype(jnp.float32))
    w2p = jnp.zeros((hp, cp), jnp.bfloat16).at[:h_dim, :c_dim].set(
        w2.astype(jnp.bfloat16))
    b2p = jnp.zeros((1, cp), jnp.float32).at[:, :c_dim].set(
        b2.reshape(1, -1).astype(jnp.float32))

    vmem_cap = _vmem_capacity_bytes()
    vmem_limit = min(int(vmem_cap * 0.75), vmem_cap - (8 << 20))

    # ---------- fused path: A resident in VMEM across BOTH layers ----------
    fused_bytes = (
        n * n * 2                         # A (bf16, resident)
        + n * f_in * 2                    # X
        + n * hp * (2 + 4 + 4)            # XW1 bf16 + f32 acc + H f32
        + n * cp * (2 + 4 + 4)            # HW2 bf16/f32 + out f32
        + (f_in * hp + hp * cp) * 2 + (hp + cp) * 4)
    if not force_streaming and fused_bytes <= vmem_limit - (4 << 20):
        out = pl.pallas_call(
            _fused_gcn_kernel,
            out_shape=jax.ShapeDtypeStruct((n, cp), jnp.float32),
            compiler_params=pltpu.CompilerParams(vmem_limit_bytes=vmem_limit),
        )(a_bf, x_bf, w1p, b1p, w2p, b2p)
        return out[:, :c_dim]

    # ---------- streaming path: A row tiles streamed from HBM ----------
    resident = (n * hp * 2 + n * cp * 2
                + (f_in * hp + hp * cp) * 2 + (hp + cp) * 4)
    tm = _pick_row_tile(n, resident, vmem_limit, vmem_cap)
    np_ = _round_up(n, tm)

    if np_ != n:
        # Zero-padded rows/cols of A and rows of X contribute nothing.
        a_bf = jnp.zeros((np_, np_), jnp.bfloat16).at[:n, :n].set(a_bf)
        x_bf = jnp.zeros((np_, f_in), jnp.bfloat16).at[:n, :].set(x_bf)

    grid = (np_ // tm,)
    # Row tiles are fully independent -> "parallel" (megacore sharding on v7x).
    # TODO(synk): verify v7x actually splits across its 2 TCs; if not, switch
    # to pltpu.CORE_PARALLEL / pl.core_map, and consider pl.Buffered(3) on the
    # streamed-A spec when tm is forced small by the 64 MiB VMEM.
    cparams = pltpu.CompilerParams(
        dimension_semantics=("parallel",),
        vmem_limit_bytes=vmem_limit,
    )

    # 1) Hoisted feature transform: XW1 = X @ W1 (one pass over X).
    xw1 = pl.pallas_call(
        _xw_kernel,
        out_shape=jax.ShapeDtypeStruct((np_, hp), jnp.bfloat16),
        grid=grid,
        in_specs=[pl.BlockSpec((tm, f_in), lambda i: (i, 0)),
                  pl.BlockSpec((f_in, hp), lambda i: (0, 0))],
        out_specs=pl.BlockSpec((tm, hp), lambda i: (i, 0)),
        compiler_params=cparams,
    )(x_bf, w1p)

    # 2) Layer-1 aggregation + ReLU with layer-2's feature transform fused in.
    hw2 = pl.pallas_call(
        _agg_relu_xform_kernel,
        out_shape=jax.ShapeDtypeStruct((np_, cp), jnp.bfloat16),
        grid=grid,
        in_specs=[pl.BlockSpec((tm, np_), lambda i: (i, 0)),   # streamed A
                  pl.BlockSpec((np_, hp), lambda i: (0, 0)),   # resident XW1
                  pl.BlockSpec((1, hp), lambda i: (0, 0)),     # bias1
                  pl.BlockSpec((hp, cp), lambda i: (0, 0))],   # resident W2
        out_specs=pl.BlockSpec((tm, cp), lambda i: (i, 0)),
        compiler_params=cparams,
    )(a_bf, xw1, b1p, w2p)

    # 3) Layer-2 aggregation: out = A @ HW2 + b2.
    out = pl.pallas_call(
        _agg_bias_kernel,
        out_shape=jax.ShapeDtypeStruct((np_, cp), jnp.float32),
        grid=grid,
        in_specs=[pl.BlockSpec((tm, np_), lambda i: (i, 0)),   # streamed A
                  pl.BlockSpec((np_, cp), lambda i: (0, 0)),   # resident HW2
                  pl.BlockSpec((1, cp), lambda i: (0, 0))],    # bias2
        out_specs=pl.BlockSpec((tm, cp), lambda i: (i, 0)),
        compiler_params=cparams,
    )(a_bf, hw2, b2p)

    return out[:n, :c_dim]


# ----------------------------------------------------------------------------
# Glue: dense symmetric-normalized adjacency D^{-1/2}(A+I)D^{-1/2}.
# Duplicate edges are accumulated (scatter-add).  NOTE: graphs whose
# edge_index already contains self-loops double-count them vs. torch_geometric
# gcn_norm bookkeeping.
# ----------------------------------------------------------------------------
def build_normalized_adjacency(edge_index, num_nodes, dtype=jnp.float32):
    src = edge_index[0]
    dst = edge_index[1]
    a = jnp.zeros((num_nodes, num_nodes), jnp.float32).at[dst, src].add(1.0)
    a = a + jnp.eye(num_nodes, dtype=jnp.float32)          # self loops
    deg = a.sum(axis=1)
    dinv = jnp.where(deg > 0, jax.lax.rsqrt(deg), 0.0)
    return (dinv[:, None] * a * dinv[None, :]).astype(dtype)


# Pure-JAX f32 reference for correctness checking.
def gcn_ref(a_norm, x, w1, b1, w2, b2):
    h = a_norm @ (x @ w1) + b1
    h = jnp.maximum(h, 0.0)
    return a_norm @ (h @ w2) + b2


if __name__ == "__main__":
    num_nodes = 64
    num_node_features = 16
    hidden = 16            # GCNConv(num_node_features, 16)
    num_classes = 8
    num_edges = 128

    key = jax.random.PRNGKey(0)
    k_x, k_e, k_w1, k_w2 = jax.random.split(key, 4)

    x = jax.random.normal(k_x, (num_nodes, num_node_features), jnp.float32)

    # Deterministic random undirected graph (both directions of each edge).
    ends = jax.random.randint(k_e, (2, num_edges), 0, num_nodes)
    edge_index = jnp.concatenate(
        [ends, jnp.stack([ends[1], ends[0]])], axis=1
    ).astype(jnp.int32)

    def glorot(k, fan_in, fan_out):
        lim = (6.0 / (fan_in + fan_out)) ** 0.5
        return jax.random.uniform(k, (fan_in, fan_out), jnp.float32, -lim, lim)

    w1 = glorot(k_w1, num_node_features, hidden)
    b1 = jnp.zeros((1, hidden), jnp.float32)
    w2 = glorot(k_w2, hidden, num_classes)
    b2 = jnp.zeros((1, num_classes), jnp.float32)

    a_norm = build_normalized_adjacency(edge_index, num_nodes)  # f32 reference copy
    ref = gcn_ref(a_norm, x, w1, b1, w2, b2)

    # Fused single-call path (A resident in VMEM) — the default at this size.
    fwd_fused = jax.jit(embedding_gcn_forward)
    out_fused = jax.block_until_ready(fwd_fused(a_norm, x, w1, b1, w2, b2))
    assert out_fused.shape == (num_nodes, num_classes)
    # bf16 A / weights with f32 accumulation -> loosened tolerance vs f32 ref.
    assert jnp.allclose(out_fused, ref, atol=1e-1, rtol=1e-1)

    # Also exercise the streamed (large-graph) path at small size.
    fwd_stream = jax.jit(
        functools.partial(embedding_gcn_forward, force_streaming=True))
    out_stream = jax.block_until_ready(fwd_stream(a_norm, x, w1, b1, w2, b2))
    assert out_stream.shape == (num_nodes, num_classes)
    assert jnp.allclose(out_stream, ref, atol=1e-1, rtol=1e-1)

    print("KERNEL_OK")
</pallas_src>

<mosaic_0001>
module attributes {stable_mosaic.version = 11 : i64} {
  func.func @_fused_gcn_kernel(%arg0: memref<64x64xbf16, #tpu.memory_space<vmem>>, %arg1: memref<64x16xbf16, #tpu.memory_space<vmem>>, %arg2: memref<16x128xbf16, #tpu.memory_space<vmem>>, %arg3: memref<1x128xf32, #tpu.memory_space<vmem>>, %arg4: memref<128x128xbf16, #tpu.memory_space<vmem>>, %arg5: memref<1x128xf32, #tpu.memory_space<vmem>>, %arg6: memref<64x128xf32, #tpu.memory_space<vmem>>) attributes {dimension_semantics = [], scalar_prefetch = 0 : i64, scratch_operands = 0 : i64, tpu.core_type = #tpu.core_type<tc>} {
    %c0 = arith.constant 0 : index
    %c0_0 = arith.constant 0 : index
    %0 = vector.load %arg1[%c0, %c0_0] : memref<64x16xbf16, #tpu.memory_space<vmem>>, vector<64x16xbf16>
    %c0_1 = arith.constant 0 : index
    %c0_2 = arith.constant 0 : index
    %1 = vector.load %arg2[%c0_1, %c0_2] : memref<16x128xbf16, #tpu.memory_space<vmem>>, vector<16x128xbf16>
    %cst = arith.constant dense<0.000000e+00> : vector<64x128xf32>
    %2 = tpu.matmul %0, %1, %cst {dimension_numbers = #tpu.dot_dimension_numbers<[1], [0], [0], [1], [0, 0, 1, 1], [], []>} : vector<64x16xbf16>, vector<16x128xbf16>, vector<64x128xf32> -> vector<64x128xf32>
    %c0_3 = arith.constant 0 : index
    %c0_4 = arith.constant 0 : index
    %3 = vector.load %arg0[%c0_3, %c0_4] : memref<64x64xbf16, #tpu.memory_space<vmem>>, vector<64x64xbf16>
    %4 = arith.truncf %2 : vector<64x128xf32> to vector<64x128xbf16>
    %cst_5 = arith.constant dense<0.000000e+00> : vector<64x128xf32>
    %5 = tpu.matmul %3, %4, %cst_5 {dimension_numbers = #tpu.dot_dimension_numbers<[1], [0], [0], [1], [0, 0, 1, 1], [], []>} : vector<64x64xbf16>, vector<64x128xbf16>, vector<64x128xf32> -> vector<64x128xf32>
    %c0_6 = arith.constant 0 : index
    %c0_7 = arith.constant 0 : index
    %6 = vector.load %arg3[%c0_6, %c0_7] : memref<1x128xf32, #tpu.memory_space<vmem>>, vector<1x128xf32>
    %7 = vector.broadcast %6 : vector<1x128xf32> to vector<64x128xf32>
    %8 = arith.addf %5, %7 : vector<64x128xf32>
    %cst_8 = arith.constant 0.000000e+00 : f32
    %9 = vector.broadcast %cst_8 : f32 to vector<64x128xf32>
    %10 = arith.maximumf %8, %9 : vector<64x128xf32>
    %11 = arith.truncf %10 : vector<64x128xf32> to vector<64x128xbf16>
    %c0_9 = arith.constant 0 : index
    %c0_10 = arith.constant 0 : index
    %12 = vector.load %arg4[%c0_9, %c0_10] : memref<128x128xbf16, #tpu.memory_space<vmem>>, vector<128x128xbf16>
    %cst_11 = arith.constant dense<0.000000e+00> : vector<64x128xf32>
    %13 = tpu.matmul %11, %12, %cst_11 {dimension_numbers = #tpu.dot_dimension_numbers<[1], [0], [0], [1], [0, 0, 1, 1], [], []>} : vector<64x128xbf16>, vector<128x128xbf16>, vector<64x128xf32> -> vector<64x128xf32>
    %c0_12 = arith.constant 0 : index
    %c0_13 = arith.constant 0 : index
    %14 = vector.load %arg0[%c0_12, %c0_13] : memref<64x64xbf16, #tpu.memory_space<vmem>>, vector<64x64xbf16>
    %15 = arith.truncf %13 : vector<64x128xf32> to vector<64x128xbf16>
    %cst_14 = arith.constant dense<0.000000e+00> : vector<64x128xf32>
    %16 = tpu.matmul %14, %15, %cst_14 {dimension_numbers = #tpu.dot_dimension_numbers<[1], [0], [0], [1], [0, 0, 1, 1], [], []>} : vector<64x64xbf16>, vector<64x128xbf16>, vector<64x128xf32> -> vector<64x128xf32>
    %c0_15 = arith.constant 0 : index
    %c0_16 = arith.constant 0 : index
    %17 = vector.load %arg5[%c0_15, %c0_16] : memref<1x128xf32, #tpu.memory_space<vmem>>, vector<1x128xf32>
    %18 = vector.broadcast %17 : vector<1x128xf32> to vector<64x128xf32>
    %19 = arith.addf %16, %18 : vector<64x128xf32>
    %c0_17 = arith.constant 0 : index
    %c0_18 = arith.constant 0 : index
    %20 = vector.load %arg6[%c0_17, %c0_18] : memref<64x128xf32, #tpu.memory_space<vmem>>, vector<64x128xf32>
    tpu.vector_store %arg6[%c0_17, %c0_18], %19 {strides = array<i32>} : memref<64x128xf32, #tpu.memory_space<vmem>>, vector<64x128xf32>,
    return
  }
}

</mosaic_0001>

<bundles_post_ra>
// kernel: embedding_gcn_forward.1
= control target key start
LH: loop header
LB: loop body
LE: loop exit
PB: predicated region body
PF: predicated region fallthrough
CT: control target
= control target key end

     0   :  { %vm60_vm0 = vcmask 130048   ;;  %vm138_vm1 = vcmask 523264   ;;  %s573_s2 = inlined_call_operand.vmem [shape: bf16[16,128], index: 2, kind: input, shape index: {}]   ;;  %s574_s1 = inlined_call_operand.vmem [shape: bf16[64,16], index: 1, kind: input, shape index: {}]   ;;  %s575_s3 = inlined_call_operand.vmem [shape: f32[1,128], index: 3, kind: input, shape index: {}]   ;;  %s576_s0 = inlined_call_operand.vmem [shape: bf16[64,64], index: 0, kind: input, shape index: {}]   ;;  %s577_s4 = inlined_call_operand.vmem [shape: bf16[128,128], index: 4, kind: input, shape index: {}]   ;;  %s578_s5 = inlined_call_operand.vmem [shape: f32[1,128], index: 5, kind: input, shape index: {}]   ;;  %s579_s6 = inlined_call_operand.vmem [shape: f32[64,128], index: 6, kind: output, shape index: {}]  }
   0x1   :  { %v418_v0 = vld [vmem:[%s573_s2] sm:$0xff]  ;;  %v415_v2 = vld [vmem:[%s574_s1 + $0x8] sm:$0xff]  ;;  %v416_v3 = vld [vmem:[%s574_s1 + $0x10] sm:$0xff] }
   0x2   :  { %v414_v1 = vld [vmem:[%s574_s1] sm:$0xff]  ;;  %80 = vmatpush.bf16.msra.mxu0 %v418_v0  ;;  %v417_v4 = vld [vmem:[%s574_s1 + $0x18] sm:$0xff]  ;;  %v493_v18 = vld [vmem:[%s576_s0 + $0x8] sm:$0xff] }
   0x3   :  { %v486_v17 = vld [vmem:[%s576_s0] sm:$0xff]  ;;  %v430_v19 = vld [vmem:[%s577_s4 + $0x38] sm:$0xff]  ;;  %v429_v20 = vld [vmem:[%s577_s4 + $0x30] sm:$0xff] }
   0x4   :  { %256 = vmatpush.bf16.msra.mxu2 %v430_v19  ;;  %v428_v21 = vld [vmem:[%s577_s4 + $0x28] sm:$0xff]  ;;  %v427_v22 = vld [vmem:[%s577_s4 + $0x20] sm:$0xff]  ;;  %v512_v23 = vld [vmem:[%s576_s0 + $0x10] sm:$0xff] }
   0x5   :  { %354 = vmatmul.msk.bf16.vlgmr.msra.gmra.mxu0 %vm60_vm0, %v414_v1  ;;  %v519_v24 = vld [vmem:[%s576_s0 + $0x18] sm:$0xff]  ;;  %v425_v26 = vld [vmem:[%s577_s4 + $0x10] sm:$0xff]  ;;  %v424_v27 = vld [vmem:[%s577_s4 + $0x8] sm:$0xff] }
   0x6   :  { %v426_v25 = vld [vmem:[%s577_s4 + $0x18] sm:$0xff]  ;;  %v423_v28 = vld [vmem:[%s577_s4] sm:$0xff] }
   0x7   :  { %v431_v30 = vld [vmem:[%s575_s3] ss:$0 sm:$0xff] }
   0x8   :  { %257 = vmatpush.bf16.msra.mxu2 %v429_v20 }
   0xc   :  { %258 = vmatpush.bf16.msra.mxu2 %v428_v21 }
  0x10   :  { %259 = vmatpush.bf16.msra.mxu2 %v427_v22 }
  0x14   :  { %260 = vmatpush.bf16.msra.mxu2 %v426_v25 }
  0x15   :  { %355 = vmatmul.msk.bf16.gmra.mxu0 %vm60_vm0, %v415_v2 }
  0x18   :  { %261 = vmatpush.bf16.msra.mxu2 %v425_v26 }
  0x1c   :  { %262 = vmatpush.bf16.msra.mxu2 %v424_v27 }
  0x20   :  { %263 = vmatpush.bf16.msra.mxu2 %v423_v28 }
  0x25   :  { %356 = vmatmul.msk.bf16.gmra.mxu0 %vm60_vm0, %v416_v3 }
  0x35   :  { %357 = vmatmul.msk.bf16.gmra.mxu0 %vm60_vm0, %v417_v4 }
  0x82   :  { %v82_v5 = vpop.f32.mrf.mxu0 }
  0x8a   :  { %v84_v6 = vpop.f32.mrf.mxu0 }
  0x8b   :  { %v110_v16 = vpack.c.bf16 %v84_v6, %v82_v5  ;;  %v432_v6 = vld [vmem:[%s578_s5] ss:$0 sm:$0xff] }
  0x92   :  { %v87_v7 = vpop.f32.mrf.mxu0 }
  0x9a   :  { %v89_v8 = vpop.f32.mrf.mxu0 }
  0x9b   :  { %v111_v15 = vpack.c.bf16 %v89_v8, %v87_v7 }
  0xa2   :  { %v92_v9 = vpop.f32.mrf.mxu0 }
  0xaa   :  { %v94_v10 = vpop.f32.mrf.mxu0 }
  0xab   :  { %v112_v14 = vpack.c.bf16 %v94_v10, %v92_v9 }
  0xb2   :  { %v97_v11 = vpop.f32.mrf.mxu0 }
  0xba   :  { %v99_v12 = vpop.f32.mrf.mxu0 }
  0xbb   :  { %v113_v13 = vpack.c.bf16 %v99_v12, %v97_v11 }
  0xbd   :  { %155 = vmatpush.bf16.msra.mxu1 %v113_v13 }
  0xc1   :  { %156 = vmatpush.bf16.msra.mxu1 %v112_v14 }
  0xc5   :  { %157 = vmatpush.bf16.msra.mxu1 %v111_v15 }
  0xc9   :  { %158 = vmatpush.bf16.msra.mxu1 %v110_v16 }
  0xcc   :  { %374 = vmatmul.msk.bf16.vlgmr.msra.gmra.mxu1 %vm138_vm1, %v486_v17 }
  0xdc   :  { %375 = vmatmul.msk.bf16.gmra.mxu1 %vm138_vm1, %v493_v18 }
  0xec   :  { %376 = vmatmul.msk.bf16.gmra.mxu1 %vm138_vm1, %v512_v23 }
  0xfc   :  { %377 = vmatmul.msk.bf16.gmra.mxu1 %vm138_vm1, %v519_v24 }
 0x149   :  { %v160_v29 = vpop.f32.mrf.mxu1 }
 0x14a   :  { %v161_v31 = vadd.f32 %v431_v30, %v160_v29 }
 0x14c   :  { %v180_v34 = vmax.f32 %v161_v31, 0.0 }
 0x151   :  { %v162_v32 = vpop.f32.mrf.mxu1 }
 0x152   :  { %v163_v33 = vadd.f32 %v431_v30, %v162_v32 }
 0x154   :  { %v181_v35 = vmax.f32 %v163_v33, 0.0 }
 0x156   :  { %v188_v36 = vpack.c.bf16 %v181_v35, %v180_v34 }
 0x158   :  { %264 = vmatmul.bf16.vlgmr.msra.gmra.mxu2 %v188_v36 }
 0x159   :  { %v165_v37 = vpop.f32.mrf.mxu1 }
 0x15a   :  { %v166_v38 = vadd.f32 %v431_v30, %v165_v37 }
 0x15c   :  { %v182_v41 = vmax.f32 %v166_v38, 0.0 }
 0x161   :  { %v167_v39 = vpop.f32.mrf.mxu1 }
 0x162   :  { %v168_v40 = vadd.f32 %v431_v30, %v167_v39 }
 0x164   :  { %v183_v42 = vmax.f32 %v168_v40, 0.0 }
 0x166   :  { %v189_v43 = vpack.c.bf16 %v183_v42, %v182_v41 }
 0x168   :  { %269 = vmatmul.bf16.gmra.mxu2 %v189_v43 }
 0x169   :  { %v170_v44 = vpop.f32.mrf.mxu1 }
 0x16a   :  { %v171_v45 = vadd.f32 %v431_v30, %v170_v44 }
 0x16c   :  { %v184_v48 = vmax.f32 %v171_v45, 0.0 }
 0x171   :  { %v172_v46 = vpop.f32.mrf.mxu1 }
 0x172   :  { %v173_v47 = vadd.f32 %v431_v30, %v172_v46 }
 0x174   :  { %v185_v49 = vmax.f32 %v173_v47, 0.0 }
 0x176   :  { %v190_v50 = vpack.c.bf16 %v185_v49, %v184_v48 }
 0x178   :  { %274 = vmatmul.bf16.gmra.mxu2 %v190_v50 }
 0x179   :  { %v175_v51 = vpop.f32.mrf.mxu1 }
 0x17a   :  { %v176_v52 = vadd.f32 %v431_v30, %v175_v51 }
 0x17c   :  { %v186_v55 = vmax.f32 %v176_v52, 0.0 }
 0x181   :  { %v177_v53 = vpop.f32.mrf.mxu1 }
 0x182   :  { %v178_v54 = vadd.f32 %v431_v30, %v177_v53 }
 0x184   :  { %v187_v56 = vmax.f32 %v178_v54, 0.0 }
 0x186   :  { %v191_v57 = vpack.c.bf16 %v187_v56, %v186_v55 }
 0x188   :  { %279 = vmatmul.bf16.gmra.mxu2 %v191_v57 }
 0x1db   :  { %v265_v58 = vpop.f32.mrf.mxu2 }
 0x1e3   :  { %v267_v59 = vpop.f32.mrf.mxu2 }
 0x1e4   :  { %v285_v5 = vpack.c.bf16 %v267_v59, %v265_v58 }
 0x1eb   :  { %v270_v60 = vpop.f32.mrf.mxu2 }
 0x1f3   :  { %v272_v61 = vpop.f32.mrf.mxu2 }
 0x1f4   :  { %v286_v4 = vpack.c.bf16 %v272_v61, %v270_v60 }
 0x1fb   :  { %v275_v62 = vpop.f32.mrf.mxu2 }
 0x203   :  { %v277_v63 = vpop.f32.mrf.mxu2 }
 0x204   :  { %v287_v3 = vpack.c.bf16 %v277_v63, %v275_v62 }
 0x20b   :  { %v280_v0 = vpop.f32.mrf.mxu2 }
 0x213   :  { %v282_v1 = vpop.f32.mrf.mxu2 }
 0x214   :  { %v288_v2 = vpack.c.bf16 %v282_v1, %v280_v0 }
 0x216   :  { %297 = vmatpush.bf16.msra.mxu3 %v288_v2 }
 0x21a   :  { %298 = vmatpush.bf16.msra.mxu3 %v287_v3 }
 0x21e   :  { %299 = vmatpush.bf16.msra.mxu3 %v286_v4 }
 0x222   :  { %300 = vmatpush.bf16.msra.mxu3 %v285_v5 }
 0x225   :  { %410 = vmatmul.msk.bf16.vlgmr.msra.gmra.mxu3 %vm138_vm1, %v486_v17 }
 0x235   :  { %411 = vmatmul.msk.bf16.gmra.mxu3 %vm138_vm1, %v493_v18 }
 0x245   :  { %412 = vmatmul.msk.bf16.gmra.mxu3 %vm138_vm1, %v512_v23 }
 0x255   :  { %413 = vmatmul.msk.bf16.gmra.mxu3 %vm138_vm1, %v519_v24 }
 0x2a8   :  { %v302_v7 = vpop.f32.mrf.mxu3 }
 0x2a9   :  { %v303_v8 = vadd.f32 %v432_v6, %v302_v7 }
 0x2ab   :  { %322 = vst [vmem:[%s579_s6] sm:$0xff] %v303_v8 }
 0x2b0   :  { %v304_v9 = vpop.f32.mrf.mxu3 }
 0x2b1   :  { %v305_v10 = vadd.f32 %v432_v6, %v304_v9 }
 0x2b3   :  { %323 = vst [vmem:[%s579_s6 + $0x8] sm:$0xff] %v305_v10 }
 0x2b8   :  { %v307_v11 = vpop.f32.mrf.mxu3 }
 0x2b9   :  { %v308_v12 = vadd.f32 %v432_v6, %v307_v11 }
 0x2bb   :  { %324 = vst [vmem:[%s579_s6 + $0x10] sm:$0xff] %v308_v12 }
 0x2c0   :  { %v309_v13 = vpop.f32.mrf.mxu3 }
 0x2c1   :  { %v310_v14 = vadd.f32 %v432_v6, %v309_v13 }
 0x2c3   :  { %325 = vst [vmem:[%s579_s6 + $0x18] sm:$0xff] %v310_v14 }
 0x2c8   :  { %v312_v15 = vpop.f32.mrf.mxu3 }
 0x2c9   :  { %v313_v16 = vadd.f32 %v432_v6, %v312_v15 }
 0x2cb   :  { %326 = vst [vmem:[%s579_s6 + $0x20] sm:$0xff] %v313_v16 }
 0x2d0   :  { %v314_v17 = vpop.f32.mrf.mxu3 }
 0x2d1   :  { %v315_v18 = vadd.f32 %v432_v6, %v314_v17 }
 0x2d3   :  { %327 = vst [vmem:[%s579_s6 + $0x28] sm:$0xff] %v315_v18 }
 0x2d8   :  { %v317_v19 = vpop.f32.mrf.mxu3 }
 0x2d9   :  { %v318_v20 = vadd.f32 %v432_v6, %v317_v19 }
 0x2db   :  { %328 = vst [vmem:[%s579_s6 + $0x30] sm:$0xff] %v318_v20 }
 0x2e0   :  { %v319_v21 = vpop.f32.mrf.mxu3 }
 0x2e1   :  { %v320_v22 = vadd.f32 %v432_v6, %v319_v21 }
 0x2e3   :  { %329 = vst [vmem:[%s579_s6 + $0x38] sm:$0xff] %v320_v22 }

</bundles_post_ra>
